<compile_context>
chip_gen: v6e
topology: v6e:2x2x1
jax: 0.10.0
libtpu: 0.0.40
codegen_flags: <defaults>
</compile_context>

<pallas_src>
import functools
import math

import jax
import jax.numpy as jnp
from jax.experimental import pallas as pl
from jax.experimental.pallas import tpu as pltpu


# ---------------------------------------------------------------------------
# helpers
# ---------------------------------------------------------------------------
def _pick_tile(n: int, target: int) -> int:
    """Largest tile <= target that evenly divides n (prefers multiples of 8)."""
    if n <= target:
        return n
    for t in range(target, 0, -1):
        if n % t == 0 and t % 8 == 0:
            return t
    return n


# ---------------------------------------------------------------------------
# 1) tiled linear:  Y = X @ W + b   on the flattened (B*S, D) view
# ---------------------------------------------------------------------------
def _linear_kernel(x_ref, w_ref, b_ref, o_ref):
    y = jnp.dot(x_ref[...], w_ref[...], preferred_element_type=jnp.float32)
    o_ref[...] = (y + b_ref[...]).astype(o_ref.dtype)


def linear(x2d, w, b, *, tm_target=512):
    M, Din = x2d.shape
    Dout = w.shape[1]
    tm = _pick_tile(M, tm_target)          # large lane-dense row tiles
    return pl.pallas_call(
        _linear_kernel,
        out_shape=jax.ShapeDtypeStruct((M, Dout), x2d.dtype),
        grid=(M // tm,),
        in_specs=[
            pl.BlockSpec((tm, Din), lambda i: (i, 0)),
            pl.BlockSpec((Din, Dout), lambda i: (0, 0)),   # weight resident
            pl.BlockSpec((1, Dout), lambda i: (0, 0)),     # bias resident
        ],
        out_specs=pl.BlockSpec((tm, Dout), lambda i: (i, 0)),
        compiler_params=pltpu.CompilerParams(
            dimension_semantics=("parallel",)),
    )(x2d, w, b.reshape(1, Dout))


# ---------------------------------------------------------------------------
# 2) flash-style scaled dot-product attention (online softmax)
# ---------------------------------------------------------------------------
def _attn_kernel(*refs, scale, has_mask):
    if has_mask:
        q_ref, k_ref, v_ref, mask_ref, o_ref, m_sc, l_sc, acc_sc = refs
    else:
        q_ref, k_ref, v_ref, o_ref, m_sc, l_sc, acc_sc = refs
        mask_ref = None

    ki = pl.program_id(3)

    @pl.when(ki == 0)
    def _():
        m_sc[...] = jnp.full_like(m_sc, -jnp.inf)
        l_sc[...] = jnp.zeros_like(l_sc)
        acc_sc[...] = jnp.zeros_like(acc_sc)

    # pre-scale Q (tq x d_k mul, cheaper than scaling the tq x tk score tile)
    q = q_ref[...].astype(jnp.float32) * scale
    s = jnp.dot(q, k_ref[...].astype(jnp.float32).T,
                preferred_element_type=jnp.float32)          # (tq, tk)
    if mask_ref is not None:
        s = jnp.where(mask_ref[...] == 0, jnp.float32(-1e9), s)

    m_prev = m_sc[...]
    m_new = jnp.maximum(m_prev, s.max(axis=-1, keepdims=True))
    alpha = jnp.exp(m_prev - m_new)
    p = jnp.exp(s - m_new)
    l_sc[...] = alpha * l_sc[...] + p.sum(axis=-1, keepdims=True)
    acc_sc[...] = alpha * acc_sc[...] + jnp.dot(
        p.astype(v_ref.dtype), v_ref[...], preferred_element_type=jnp.float32)
    m_sc[...] = m_new

    # TODO(synk): training-mode dropout on the attention probabilities is not
    # implemented; this is the eval-mode forward where nn.Dropout is identity.

    @pl.when(ki == pl.num_programs(3) - 1)
    def _():
        o_ref[...] = (acc_sc[...] *
                      pl.reciprocal(l_sc[...], approx=True)).astype(o_ref.dtype)


def _attention(q4, k4, v4, mask, *, tq, tk):
    """q4: (B, h, Sq, d_k); k4/v4: (B, h, Sk, d_k); mask: (B, Sq, Sk) or None."""
    B, h, Sq, d_k = q4.shape
    Sk = k4.shape[2]
    scale = 1.0 / math.sqrt(d_k)
    nq, nk = Sq // tq, Sk // tk

    q_spec = pl.BlockSpec((None, None, tq, d_k), lambda b, hh, qi, ki: (b, hh, qi, 0))
    kv_spec = pl.BlockSpec((None, None, tk, d_k), lambda b, hh, qi, ki: (b, hh, ki, 0))
    o_spec = pl.BlockSpec((None, None, tq, d_k), lambda b, hh, qi, ki: (b, hh, qi, 0))

    in_specs = [q_spec, kv_spec, kv_spec]
    args = [q4, k4, v4]
    has_mask = mask is not None
    if has_mask:
        in_specs.append(
            pl.BlockSpec((None, tq, tk), lambda b, hh, qi, ki: (b, qi, ki)))
        args.append(mask)

    kernel = functools.partial(_attn_kernel, scale=scale, has_mask=has_mask)

    return pl.pallas_call(
        kernel,
        out_shape=jax.ShapeDtypeStruct((B, h, Sq, d_k), q4.dtype),
        grid=(B, h, nq, nk),
        in_specs=in_specs,
        out_specs=o_spec,
        scratch_shapes=[
            pltpu.VMEM((tq, 1), jnp.float32),     # running max m
            pltpu.VMEM((tq, 1), jnp.float32),     # running denom l
            pltpu.VMEM((tq, d_k), jnp.float32),   # accumulator
        ],
        compiler_params=pltpu.CompilerParams(
            dimension_semantics=("parallel", "parallel", "parallel", "arbitrary")),
    )(*args)


# ---------------------------------------------------------------------------
# Q/K/V projections with fusion when inputs alias
# ---------------------------------------------------------------------------
def _project_qkv(query, key, value, params):
    B, Sq, D = query.shape
    Sk = key.shape[1]
    xq = query.reshape(B * Sq, D)

    if (query is key) and (key is value):
        # self-attention: one fused (D, 3D) projection
        w = jnp.concatenate([params["wq"], params["wk"], params["wv"]], axis=1)
        b = jnp.concatenate([params["bq"], params["bk"], params["bv"]])
        qkv = linear(xq, w, b)
        q_p, k_p, v_p = jnp.split(qkv, 3, axis=1)
    elif key is value:
        # enc-dec attention: fused (D, 2D) K/V projection
        q_p = linear(xq, params["wq"], params["bq"])
        w = jnp.concatenate([params["wk"], params["wv"]], axis=1)
        b = jnp.concatenate([params["bk"], params["bv"]])
        kv = linear(key.reshape(B * Sk, D), w, b)
        k_p, v_p = jnp.split(kv, 2, axis=1)
    else:
        q_p = linear(xq, params["wq"], params["bq"])
        k_p = linear(key.reshape(B * Sk, D), params["wk"], params["bk"])
        v_p = linear(value.reshape(B * Sk, D), params["wv"], params["bv"])
    return q_p, k_p, v_p


# ---------------------------------------------------------------------------
# full MultiHeadedAttention forward
# ---------------------------------------------------------------------------
def multi_headed_attention(query, key, value, params, mask=None,
                           dropout_p=0.1, training=False):
    """query: (B, Sq, d_model); key/value: (B, Sk, d_model); mask: (B, Sq, Sk)."""
    del dropout_p, training  # eval-mode forward (see TODO in kernel)
    B, Sq, D = query.shape
    Sk = key.shape[1]
    h = params["h"]
    assert D % h == 0
    d_k = D // h

    q_p, k_p, v_p = _project_qkv(query, key, value, params)

    def split_heads(x2d, S):
        return x2d.reshape(B, S, h, d_k).transpose(0, 2, 1, 3)

    tq = _pick_tile(Sq, 128)
    tk = _pick_tile(Sk, 128)
    x4 = _attention(split_heads(q_p, Sq), split_heads(k_p, Sk),
                    split_heads(v_p, Sk), mask, tq=tq, tk=tk)

    # merge heads and apply the output projection
    x2 = x4.transpose(0, 2, 1, 3).reshape(B * Sq, D)
    out = linear(x2, params["wo"], params["bo"])
    return out.reshape(B, Sq, D)


# ---------------------------------------------------------------------------
# pure-JAX reference (mirrors the PyTorch module in eval mode)
# ---------------------------------------------------------------------------
def mha_reference(query, key, value, params, mask=None):
    B, Sq, D = query.shape
    Sk = key.shape[1]
    h = params["h"]
    d_k = D // h

    def lin(x, w, b):
        return x @ w + b

    def split(x, S):
        return x.reshape(B, S, h, d_k).transpose(0, 2, 1, 3)

    q = split(lin(query, params["wq"], params["bq"]), Sq)
    k = split(lin(key, params["wk"], params["bk"]), Sk)
    v = split(lin(value, params["wv"], params["bv"]), Sk)
    scores = jnp.einsum("bhqd,bhkd->bhqk", q, k) / math.sqrt(d_k)
    if mask is not None:
        scores = jnp.where(mask[:, None, :, :] == 0, -1e9, scores)
    p = jax.nn.softmax(scores, axis=-1)
    x = jnp.einsum("bhqk,bhkd->bhqd", p, v)
    x = x.transpose(0, 2, 1, 3).reshape(B, Sq, D)
    return x @ params["wo"] + params["bo"]


if __name__ == "__main__":
    B, S, d_model, h = 2, 8, 32, 4

    key = jax.random.PRNGKey(0)
    ks = jax.random.split(key, 12)
    x = jax.random.normal(ks[0], (B, S, d_model), jnp.float32)        # self-attn input
    qx = jax.random.normal(ks[1], (B, S, d_model), jnp.float32)       # cross-attn query
    mem = jax.random.normal(ks[2], (B, 2 * S, d_model), jnp.float32)  # cross-attn memory

    def init_lin(kw, kb):
        w = jax.random.normal(kw, (d_model, d_model), jnp.float32) / math.sqrt(d_model)
        b = jax.random.normal(kb, (d_model,), jnp.float32) * 0.01
        return w, b

    wq, bq = init_lin(ks[3], ks[4])
    wk, bk = init_lin(ks[5], ks[6])
    wv, bv = init_lin(ks[7], ks[8])
    wo, bo = init_lin(ks[9], ks[10])
    params = dict(h=h, wq=wq, bq=bq, wk=wk, bk=bk, wv=wv, bv=bv, wo=wo, bo=bo)

    # causal ("subsequent") mask shared across heads: (B, S, S)
    mask = jnp.broadcast_to(
        jnp.tril(jnp.ones((S, S), jnp.int32))[None], (B, S, S)).astype(jnp.int32)

    # masked self-attention (exercises the fused QKV projection path)
    out = multi_headed_attention(x, x, x, params, mask=mask)
    jax.block_until_ready(out)
    assert out.shape == (B, S, d_model) and out.dtype == x.dtype
    ref = mha_reference(x, x, x, params, mask=mask)
    assert jnp.allclose(out, ref, atol=2e-2, rtol=2e-2), "masked self-attn mismatch"

    # unmasked cross-attention, Sq != Sk (exercises the fused K/V projection path)
    out_x = multi_headed_attention(qx, mem, mem, params, mask=None)
    jax.block_until_ready(out_x)
    ref_x = mha_reference(qx, mem, mem, params, mask=None)
    assert jnp.allclose(out_x, ref_x, atol=2e-2, rtol=2e-2), "cross-attn mismatch"

    print("KERNEL_OK")
</pallas_src>

<mosaic_0001>
module attributes {stable_mosaic.version = 11 : i64} {
  func.func @_linear_kernel(%arg0: i32, %arg1: memref<16x32xf32, #tpu.memory_space<vmem>>, %arg2: memref<32x96xf32, #tpu.memory_space<vmem>>, %arg3: memref<1x96xf32, #tpu.memory_space<vmem>>, %arg4: memref<16x96xf32, #tpu.memory_space<vmem>>) attributes {dimension_semantics = [#tpu.dimension_semantics<parallel>], iteration_bounds = array<i64: 1>, scalar_prefetch = 0 : i64, scratch_operands = 0 : i64, tpu.core_type = #tpu.core_type<tc>, window_params = [{transform_indices = @transform_0, window_bounds = array<i64: 16, 32>}, {pipeline_mode = #tpu.pipeline_mode<synchronous>, transform_indices = @transform_1, window_bounds = array<i64: 32, 96>}, {pipeline_mode = #tpu.pipeline_mode<synchronous>, transform_indices = @transform_2, window_bounds = array<i64: 1, 96>}, {transform_indices = @transform_3, window_bounds = array<i64: 16, 96>}]} {
    %c0 = arith.constant 0 : index
    %c0_0 = arith.constant 0 : index
    %0 = vector.load %arg1[%c0, %c0_0] : memref<16x32xf32, #tpu.memory_space<vmem>>, vector<16x32xf32>
    %c0_1 = arith.constant 0 : index
    %c0_2 = arith.constant 0 : index
    %1 = vector.load %arg2[%c0_1, %c0_2] : memref<32x96xf32, #tpu.memory_space<vmem>>, vector<32x96xf32>
    %cst = arith.constant dense<0.000000e+00> : vector<16x96xf32>
    %2 = tpu.matmul %0, %1, %cst {dimension_numbers = #tpu.dot_dimension_numbers<[1], [0], [0], [1], [0, 0, 1, 1], [], []>} : vector<16x32xf32>, vector<32x96xf32>, vector<16x96xf32> -> vector<16x96xf32>
    %c0_3 = arith.constant 0 : index
    %c0_4 = arith.constant 0 : index
    %3 = vector.load %arg3[%c0_3, %c0_4] : memref<1x96xf32, #tpu.memory_space<vmem>>, vector<1x96xf32>
    %4 = vector.broadcast %3 : vector<1x96xf32> to vector<16x96xf32>
    %5 = arith.addf %2, %4 : vector<16x96xf32>
    %c0_5 = arith.constant 0 : index
    %c0_6 = arith.constant 0 : index
    %6 = vector.load %arg4[%c0_5, %c0_6] : memref<16x96xf32, #tpu.memory_space<vmem>>, vector<16x96xf32>
    tpu.vector_store %arg4[%c0_5, %c0_6], %5 {strides = array<i32>} : memref<16x96xf32, #tpu.memory_space<vmem>>, vector<16x96xf32>,
    return
  }
  func.func @transform_0(%arg0: i32) -> (i32, i32) {
    %c0_i32 = arith.constant 0 : i32
    %c0_i32_0 = arith.constant 0 : i32
    return %arg0, %c0_i32 : i32, i32
  }
  func.func @transform_1(%arg0: i32) -> (i32, i32) {
    %c0_i32 = arith.constant 0 : i32
    %c0_i32_0 = arith.constant 0 : i32
    %c0_i32_1 = arith.constant 0 : i32
    return %c0_i32, %c0_i32_0 : i32, i32
  }
  func.func @transform_2(%arg0: i32) -> (i32, i32) {
    %c0_i32 = arith.constant 0 : i32
    %c0_i32_0 = arith.constant 0 : i32
    %c0_i32_1 = arith.constant 0 : i32
    return %c0_i32, %c0_i32_0 : i32, i32
  }
  func.func @transform_3(%arg0: i32) -> (i32, i32) {
    %c0_i32 = arith.constant 0 : i32
    %c0_i32_0 = arith.constant 0 : i32
    return %arg0, %c0_i32 : i32, i32
  }
}

</mosaic_0001>

<bundles_post_ra>
// kernel: tpu_custom_call.1
= control target key start
LH: loop header
LB: loop body
LE: loop exit
PB: predicated region body
PF: predicated region fallthrough
CT: control target
= control target key end

     0   :  { %8 = vsyncpa [#allocation3], 0  ;;  %s298_s0 = inlined_call_operand.hbm [shape: f32[16,32], index: 0, kind: input, shape index: {}]   ;;  %s299_s1 = inlined_call_operand.hbm [shape: f32[32,96], index: 1, kind: input, shape index: {}]   ;;  %s300_s2 = inlined_call_operand.vmem [shape: f32[1,96], index: 2, kind: input, shape index: {}]   ;;  %s301_s3 = inlined_call_operand.hbm [shape: f32[16,96], index: 3, kind: output, shape index: {}]  }
   0x1   :  { %9 = vsyncpa [#allocation6], 0 }
   0x2   :  { %10 = vsyncpa [#allocation4], 0  ;;  %s250_s12 = smov [#allocation2]  }
   0x3   :  { %s16_s13 = sshll.u32 %s250_s12, 4  ;;  %s17_s13 = int_to_ptr.vmem [resolvable:$true] %s16_s13 }
   0x4   :  { %s192_s14 = scalar_lea.vmem %s17_s13, 256  ;;  %p197_p1 = scmp.lt.s32.totalorder %s17_s13, %s17_s13 }
   0x5   :  { %p193_p0 = scmp.ne.s32.totalorder %s17_s13, %s192_s14  ;;  %p198_p2 = scmp.lt.s32.totalorder %s192_s14, %s192_s14 }
   0x7   :  { %p199_p3 = por %p198_p2, %p197_p1 }
   0x9   :  { %p200_p4 = pnand %p199_p3, %p193_p0 }
   0xb   :  { %203 = shalt.err (!%p200_p4)
}
   0xc   :  { %s251_s15 = smov 128   ;;  %s252_s16 = smov 8  }
   0xd   :  { %22 = dma.hbm_to_vmem [thread:$0]  %s298_s0, 256, %s17_s13, [#allocation3], %s251_s15, %s251_s15, %s252_s16  }
   0xe   :  { %s253_s19 = smov [#allocation5]  }
   0xf   :  { %s28_s20 = sshll.u32 %s253_s19, 4  ;;  %s29_s20 = int_to_ptr.vmem [resolvable:$true] %s28_s20 }
  0x10   :  { %s212_s21 = scalar_lea.vmem %s29_s20, 512  ;;  %p217_p6 = scmp.lt.s32.totalorder %s29_s20, %s29_s20 }
  0x11   :  { %p213_p5 = scmp.ne.s32.totalorder %s29_s20, %s212_s21  ;;  %p218_p7 = scmp.lt.s32.totalorder %s212_s21, %s212_s21 }
  0x13   :  { %p219_p8 = por %p218_p7, %p217_p6 }
  0x15   :  { %p220_p9 = pnand %p219_p8, %p213_p5 }
  0x17   :  { %223 = shalt.err (!%p220_p9)
}
  0x18   :  { %34 = dma.hbm_to_vmem [thread:$0]  %s299_s1, 512, %s29_s20, [#allocation6], %s251_s15, %s251_s15, %s252_s16  }
  0x19   :  { %244 = dma.done.wait [#allocation3], 256  }
  0x1a   :  { %245 = vsyncadd [#allocation3], 4294967040 }
  0x1b   :  { %246 = dma.done.wait [#allocation6], 512  }
  0x1c   :  { %247 = vsyncadd [#allocation6], 4294966784  ;;  %vm56_vm0 = vcmask 261120   ;;  %v48_v0 = vld [vmem:[#allocation5 + $0x18] sm:$0xff]  ;;  %v47_v1 = vld [vmem:[#allocation5 + $0x10] sm:$0xff]  ;;  %vm138_vm1 = vcmask 785408  }
  0x1d   :  { %168 = vmatprep.subr.mxu0 %v48_v0  ;;  %v43_v2 = vld [vmem:[#allocation2] sm:$0xff]  ;;  %v46_v3 = vld [vmem:[#allocation5 + $0x8] sm:$0xff]  ;;  %v45_v4 = vld [vmem:[#allocation5] sm:$0xff]  ;;  %s254_s24 = smov [#allocation7]  }
  0x1e   :  { %169 = vmatpush3.msra.mxu0 %v48_v0  ;;  %176 = vmatprep.mubr.msk.f32.mxu0 %vm56_vm0, %v43_v2  ;;  %v44_v5 = vld [vmem:[#allocation2 + $0x8] sm:$0xff]  ;;  %v159_v6 = vld [vmem:[%s300_s2] ss:$0 sm:$0xff]  ;;  %s146_s25 = sshll.u32 %s254_s24, 4  ;;  %s147_s25 = int_to_ptr.vmem [resolvable:$true] %s146_s25 }
  0x1f   :  { %170 = vmatprep.subr.mxu0 %v47_v1  ;;  %s224_s26 = scalar_lea.vmem %s147_s25, 256  ;;  %p229_p11 = scmp.lt.s32.totalorder %s147_s25, %s147_s25 }
  0x20   :  { %171 = vmatpush3.msra.mxu0 %v47_v1  ;;  %p225_p10 = scmp.ne.s32.totalorder %s147_s25, %s224_s26  ;;  %p230_p12 = scmp.lt.s32.totalorder %s224_s26, %s224_s26 }
  0x21   :  { %172 = vmatprep.subr.mxu0 %v46_v3 }
  0x22   :  { %173 = vmatpush3.msra.mxu0 %v46_v3  ;;  %p231_p13 = por %p230_p12, %p229_p11 }
  0x23   :  { %174 = vmatprep.subr.mxu0 %v45_v4 }
  0x24   :  { %175 = vmatpush3.msra.mxu0 %v45_v4  ;;  %p232_p0 = pnand %p231_p13, %p225_p10 }
  0x25   :  { %177 = vmatmul.mubr.msk.f32.vlgmr.msra.gmra.mxu0 %vm56_vm0, %v44_v5 }
  0xe5   :  { %v178_v7 = vpop.f32.mrf.mxu0 }
  0xe6   :  { %v135_v8 = vadd.f32 %v178_v7, %v159_v6 }
  0xe7   :  { %v129_v9 = vpop.f32.mrf.mxu0 }
  0xe8   :  { %v130_v10 = vadd.f32 %v159_v6, %v129_v9  ;;  %140 = vst.msk [vmem:[#allocation7 + $0x8] sm:$0xff] %vm138_vm1, %v135_v8 }
  0xea   :  { %139 = vst.msk [vmem:[#allocation7] sm:$0xff] %vm138_vm1, %v130_v10 }
  0xeb   :  { %235 = shalt.err (!%p232_p0)
}
  0xec   :  { %152 = dma.vmem_to_hbm [thread:$0]  %s147_s25, 256, %s301_s3, [#allocation4], %s251_s15, %s251_s15, %s252_s16  }
  0xed   :  { %248 = dma.done.wait [#allocation4], 256  }
  0xee   :  { %249 = vsyncadd [#allocation4], 4294967040 }
  0xef   :  { %156 = vsyncpa [#allocation3], 1 }
  0xf0   :  { %157 = vsyncpa [#allocation6], 1 }
  0xf1   :  { %158 = vsyncpa [#allocation4], 1 }

</bundles_post_ra>
